<compile_context>
chip_gen: v6e
topology: v6e:2x2x1
jax: 0.10.0
libtpu: 0.0.40
codegen_flags: <defaults>
</compile_context>

<pallas_src>
import functools

import jax
import jax.numpy as jnp
from jax.experimental import pallas as pl
from jax.experimental.pallas import tpu as pltpu


def _round_up(x, m):
    return (x + m - 1) // m * m


def _wnconv2d_kernel(x_ref, w_ref, b_ref, o_ref, col_ref, *,
                     K, Wp, L_pad, Cin_p, Nb):
    """One grid step: Nb batch elements, one fused MXU matmul.

    x_ref:   (Nb, Cin_p, Lin)       zero-padded, flattened input (bf16)
    w_ref:   (Cout_p, K*K*Cin_p)    im2col-ordered normalized weights (resident, bf16)
    b_ref:   (Cout_p, 1)            bias column, f32
    o_ref:   (1, Cout_p, Nb*L_pad)  flat-spatial output (lane-dense)
    col_ref: (K*K*Cin_p, Nb*L_pad)  VMEM scratch holding the im2col RHS
    """
    # Build the im2col RHS directly in VMEM with per-tap ref loads (static
    # offsets).  Row block t = kh*K + kw holds tap (kh, kw); lane block i
    # holds batch element i.  Store targets are sublane/lane tile aligned.
    for kh in range(K):
        for kw in range(K):
            t = kh * K + kw
            off = kh * Wp + kw
            for i in range(Nb):
                col_ref[t * Cin_p:(t + 1) * Cin_p,
                        i * L_pad:(i + 1) * L_pad] = x_ref[i, :, off:off + L_pad]

    # Single MXU matmul per grid step: bf16 operands, f32 accumulation.
    acc = jnp.dot(w_ref[...], col_ref[...],
                  preferred_element_type=jnp.float32)    # (Cout_p, Nb*L_pad)
    acc = acc + b_ref[...]                               # f32 bias, lane broadcast
    o_ref[0] = acc.astype(o_ref.dtype)


def wnconv2d_forward(x_nchw, v, g, bias, padding, *,
                     operand_dtype=jnp.bfloat16):
    """Weight-normalized conv2d forward (stride=1, dilation=1), NCHW in/out.

    x_nchw: (N, Cin, H, W)
    v:      (Cout, Cin, K, K)  weight_norm direction parameter
    g:      (Cout,)            weight_norm magnitude parameter
    bias:   (Cout,)
    """
    N, Cin, H, W = x_nchw.shape
    Cout, _, K, _ = v.shape
    out_dtype = x_nchw.dtype
    op_dt = jnp.dtype(operand_dtype)

    Hp, Wp = H + 2 * padding, W + 2 * padding
    Ho, Wo = Hp - K + 1, Wp - K + 1
    L = Ho * Wp                                  # valid flat outputs per image
    L_pad = _round_up(L, 128)                    # lane-dense output width

    # Channel padding: multiples of 16 for bf16 operand packing (8 for f32).
    c_align = 16 if op_dt == jnp.dtype(jnp.bfloat16) else 8
    Cin_p = _round_up(Cin, c_align)
    Cout_p = _round_up(Cout, c_align)
    KKC = K * K * Cin_p

    # Flat input length: the largest tap read is (K-1)*Wp + (K-1) + L_pad,
    # so pad to at least that (rounded to a lane multiple).  This keeps every
    # tap slice (including the L_pad garbage tail) inside the zero padding.
    Lin = _round_up((K - 1) * Wp + (K - 1) + L_pad, 128)

    # Batch elements fused per grid step (widens the RHS lane dim, reuses the
    # resident weights, amortizes per-step overhead).  Budget keeps the
    # double-buffered input + scratch + output well inside scoped VMEM.
    itm = op_dt.itemsize
    per_n = (2 * Cin_p * Lin + KKC * L_pad) * itm \
        + 2 * Cout_p * L_pad * jnp.dtype(out_dtype).itemsize
    Nb = int(max(1, min(N, (8 << 20) // max(per_n, 1), 8)))
    grid_n = -(-N // Nb)
    N_pad = grid_n * Nb

    # ---- parameter glue (plain JAX, f32): weight norm + im2col layout ----
    # TODO(synk): no epsilon in the norm (matches raw PyTorch weight_norm);
    # an all-zero filter would produce inf/nan, same as the reference module.
    v32 = v.astype(jnp.float32)
    v_norm = jnp.sqrt(jnp.sum(v32 * v32, axis=(1, 2, 3), keepdims=True))
    w = g.astype(jnp.float32).reshape(Cout, 1, 1, 1) * v32 / v_norm
    w = jnp.pad(w, ((0, Cout_p - Cout), (0, Cin_p - Cin), (0, 0), (0, 0)))
    # im2col row order in the kernel is (kh, kw, ci):
    w2d = jnp.transpose(w, (0, 2, 3, 1)).reshape(Cout_p, KKC).astype(op_dt)
    b2d = jnp.pad(bias.astype(jnp.float32), (0, Cout_p - Cout)).reshape(Cout_p, 1)

    # ---- input glue: batch/channel pad, spatial zero-pad, flatten, cast ----
    x_p = jnp.pad(x_nchw.astype(jnp.float32),
                  ((0, N_pad - N), (0, Cin_p - Cin),
                   (padding, padding), (padding, padding)))
    x_flat = x_p.reshape(N_pad, Cin_p, Hp * Wp)
    x_flat = jnp.pad(x_flat, ((0, 0), (0, 0), (0, Lin - Hp * Wp))).astype(op_dt)

    kernel = functools.partial(_wnconv2d_kernel, K=K, Wp=Wp, L_pad=L_pad,
                               Cin_p=Cin_p, Nb=Nb)

    cost = pl.CostEstimate(
        flops=2 * N * Cout * Cin * K * K * Ho * Wo,
        transcendentals=0,
        bytes_accessed=(x_nchw.size * jnp.dtype(x_nchw.dtype).itemsize
                        + v.size * 4
                        + N * Cout * Ho * Wo * jnp.dtype(out_dtype).itemsize))

    out_flat = pl.pallas_call(
        kernel,
        out_shape=jax.ShapeDtypeStruct((grid_n, Cout_p, Nb * L_pad), out_dtype),
        grid_spec=pltpu.PrefetchScalarGridSpec(
            num_scalar_prefetch=0,
            grid=(grid_n,),
            in_specs=[
                pl.BlockSpec((Nb, Cin_p, Lin), lambda n: (n, 0, 0)),
                pl.BlockSpec((Cout_p, KKC), lambda n: (0, 0)),   # resident
                pl.BlockSpec((Cout_p, 1), lambda n: (0, 0)),     # resident
            ],
            out_specs=pl.BlockSpec((1, Cout_p, Nb * L_pad), lambda n: (n, 0, 0)),
            scratch_shapes=[pltpu.VMEM((KKC, Nb * L_pad), op_dt)],
        ),
        compiler_params=pltpu.CompilerParams(
            dimension_semantics=("parallel",)),
        cost_estimate=cost,
    )(x_flat, w2d, b2d)

    # Drop lane padding, wrap-around columns, channel padding, batch padding.
    y = out_flat.reshape(grid_n, Cout_p, Nb, L_pad)[:, :, :, :L]
    y = y.reshape(grid_n, Cout_p, Nb, Ho, Wp)[:, :Cout, :, :, :Wo]
    y = jnp.transpose(y, (0, 2, 1, 3, 4)).reshape(grid_n * Nb, Cout, Ho, Wo)
    return y[:N]


def _reference_conv(x_nchw, v, g, bias, padding):
    Cout = v.shape[0]
    v_norm = jnp.sqrt(jnp.sum(v ** 2, axis=(1, 2, 3), keepdims=True))
    w = g.reshape(Cout, 1, 1, 1) * v / v_norm
    y = jax.lax.conv_general_dilated(
        x_nchw, w, window_strides=(1, 1),
        padding=((padding, padding), (padding, padding)),
        dimension_numbers=("NCHW", "OIHW", "NCHW"))
    return y + bias.reshape(1, Cout, 1, 1)


if __name__ == "__main__":
    # Small shapes consistent with the module's forward.
    N, Cin, H, W = 2, 4, 16, 16
    Cout, K, padding = 8, 3, 1

    key = jax.random.PRNGKey(0)
    kx, kv, kb = jax.random.split(key, 3)

    x = jax.random.normal(kx, (N, Cin, H, W), dtype=jnp.float32)
    # Deterministic synthetic parameters (shapes match nn.Conv2d + weight_norm).
    v = jax.random.normal(kv, (Cout, Cin, K, K), dtype=jnp.float32) * 0.1
    # weight_norm initializes g to the norm of the initial weight; emulate that.
    g = jnp.sqrt(jnp.sum(v ** 2, axis=(1, 2, 3)))
    bias = jax.random.normal(kb, (Cout,), dtype=jnp.float32) * 0.01

    y = wnconv2d_forward(x, v, g, bias, padding)
    jax.block_until_ready(y)

    y_ref = _reference_conv(x, v, g, bias, padding)
    assert y.shape == (N, Cout, H, W), y.shape
    # bf16 operands / f32 accumulation => loose-ish tolerance vs f32 reference.
    max_err = float(jnp.max(jnp.abs(y - y_ref)))
    assert jnp.allclose(y, y_ref, atol=3e-2, rtol=3e-2), max_err

    print("KERNEL_OK")
</pallas_src>

<mosaic_0001>
module attributes {stable_mosaic.version = 11 : i64} {
  func.func @_wnconv2d_kernel(%arg0: i32, %arg1: memref<2x16x512xbf16, #tpu.memory_space<vmem>>, %arg2: memref<16x144xbf16, #tpu.memory_space<vmem>>, %arg3: memref<16x1xf32, #tpu.memory_space<vmem>>, %arg4: memref<1x16x768xf32, #tpu.memory_space<vmem>>, %arg5: memref<144x768xbf16, #tpu.memory_space<vmem>>) attributes {dimension_semantics = [#tpu.dimension_semantics<parallel>], iteration_bounds = array<i64: 1>, scalar_prefetch = 0 : i64, scratch_operands = 1 : i64, tpu.core_type = #tpu.core_type<tc>, window_params = [{transform_indices = @transform_0, window_bounds = array<i64: 2, 16, 512>}, {pipeline_mode = #tpu.pipeline_mode<synchronous>, transform_indices = @transform_1, window_bounds = array<i64: 16, 144>}, {pipeline_mode = #tpu.pipeline_mode<synchronous>, transform_indices = @transform_2, window_bounds = array<i64: 16, 1>}, {transform_indices = @transform_3, window_bounds = array<i64: 1, 16, 768>}]} {
    %c0 = arith.constant 0 : index
    %c0_0 = arith.constant 0 : index
    %c0_1 = arith.constant 0 : index
    %0 = vector.load %arg1[%c0, %c0_0, %c0_1] : memref<2x16x512xbf16, #tpu.memory_space<vmem>>, vector<1x16x384xbf16>
    %1 = vector.shape_cast %0 : vector<1x16x384xbf16> to vector<16x384xbf16>
    %c0_2 = arith.constant 0 : index
    %c0_3 = arith.constant 0 : index
    %2 = vector.load %arg5[%c0_2, %c0_3] : memref<144x768xbf16, #tpu.memory_space<vmem>>, vector<16x384xbf16>
    tpu.vector_store %arg5[%c0_2, %c0_3], %1 {strides = array<i32>} : memref<144x768xbf16, #tpu.memory_space<vmem>>, vector<16x384xbf16>,
    %c1 = arith.constant 1 : index
    %c0_4 = arith.constant 0 : index
    %c0_5 = arith.constant 0 : index
    %3 = vector.load %arg1[%c1, %c0_4, %c0_5] : memref<2x16x512xbf16, #tpu.memory_space<vmem>>, vector<1x16x384xbf16>
    %4 = vector.shape_cast %3 : vector<1x16x384xbf16> to vector<16x384xbf16>
    %c0_6 = arith.constant 0 : index
    %c384 = arith.constant 384 : index
    %5 = vector.load %arg5[%c0_6, %c384] : memref<144x768xbf16, #tpu.memory_space<vmem>>, vector<16x384xbf16>
    tpu.vector_store %arg5[%c0_6, %c384], %4 {strides = array<i32>} : memref<144x768xbf16, #tpu.memory_space<vmem>>, vector<16x384xbf16>,
    %c0_7 = arith.constant 0 : index
    %c0_8 = arith.constant 0 : index
    %c1_9 = arith.constant 1 : index
    %6 = vector.load %arg1[%c0_7, %c0_8, %c1_9] : memref<2x16x512xbf16, #tpu.memory_space<vmem>>, vector<1x16x384xbf16>
    %7 = vector.shape_cast %6 : vector<1x16x384xbf16> to vector<16x384xbf16>
    %c16 = arith.constant 16 : index
    %c0_10 = arith.constant 0 : index
    %8 = vector.load %arg5[%c16, %c0_10] : memref<144x768xbf16, #tpu.memory_space<vmem>>, vector<16x384xbf16>
    tpu.vector_store %arg5[%c16, %c0_10], %7 {strides = array<i32>} : memref<144x768xbf16, #tpu.memory_space<vmem>>, vector<16x384xbf16>,
    %c1_11 = arith.constant 1 : index
    %c0_12 = arith.constant 0 : index
    %c1_13 = arith.constant 1 : index
    %9 = vector.load %arg1[%c1_11, %c0_12, %c1_13] : memref<2x16x512xbf16, #tpu.memory_space<vmem>>, vector<1x16x384xbf16>
    %10 = vector.shape_cast %9 : vector<1x16x384xbf16> to vector<16x384xbf16>
    %c16_14 = arith.constant 16 : index
    %c384_15 = arith.constant 384 : index
    %11 = vector.load %arg5[%c16_14, %c384_15] : memref<144x768xbf16, #tpu.memory_space<vmem>>, vector<16x384xbf16>
    tpu.vector_store %arg5[%c16_14, %c384_15], %10 {strides = array<i32>} : memref<144x768xbf16, #tpu.memory_space<vmem>>, vector<16x384xbf16>,
    %c0_16 = arith.constant 0 : index
    %c0_17 = arith.constant 0 : index
    %c2 = arith.constant 2 : index
    %12 = vector.load %arg1[%c0_16, %c0_17, %c2] : memref<2x16x512xbf16, #tpu.memory_space<vmem>>, vector<1x16x384xbf16>
    %13 = vector.shape_cast %12 : vector<1x16x384xbf16> to vector<16x384xbf16>
    %c32 = arith.constant 32 : index
    %c0_18 = arith.constant 0 : index
    %14 = vector.load %arg5[%c32, %c0_18] : memref<144x768xbf16, #tpu.memory_space<vmem>>, vector<16x384xbf16>
    tpu.vector_store %arg5[%c32, %c0_18], %13 {strides = array<i32>} : memref<144x768xbf16, #tpu.memory_space<vmem>>, vector<16x384xbf16>,
    %c1_19 = arith.constant 1 : index
    %c0_20 = arith.constant 0 : index
    %c2_21 = arith.constant 2 : index
    %15 = vector.load %arg1[%c1_19, %c0_20, %c2_21] : memref<2x16x512xbf16, #tpu.memory_space<vmem>>, vector<1x16x384xbf16>
    %16 = vector.shape_cast %15 : vector<1x16x384xbf16> to vector<16x384xbf16>
    %c32_22 = arith.constant 32 : index
    %c384_23 = arith.constant 384 : index
    %17 = vector.load %arg5[%c32_22, %c384_23] : memref<144x768xbf16, #tpu.memory_space<vmem>>, vector<16x384xbf16>
    tpu.vector_store %arg5[%c32_22, %c384_23], %16 {strides = array<i32>} : memref<144x768xbf16, #tpu.memory_space<vmem>>, vector<16x384xbf16>,
    %c0_24 = arith.constant 0 : index
    %c0_25 = arith.constant 0 : index
    %c18 = arith.constant 18 : index
    %18 = vector.load %arg1[%c0_24, %c0_25, %c18] : memref<2x16x512xbf16, #tpu.memory_space<vmem>>, vector<1x16x384xbf16>
    %19 = vector.shape_cast %18 : vector<1x16x384xbf16> to vector<16x384xbf16>
    %c48 = arith.constant 48 : index
    %c0_26 = arith.constant 0 : index
    %20 = vector.load %arg5[%c48, %c0_26] : memref<144x768xbf16, #tpu.memory_space<vmem>>, vector<16x384xbf16>
    tpu.vector_store %arg5[%c48, %c0_26], %19 {strides = array<i32>} : memref<144x768xbf16, #tpu.memory_space<vmem>>, vector<16x384xbf16>,
    %c1_27 = arith.constant 1 : index
    %c0_28 = arith.constant 0 : index
    %c18_29 = arith.constant 18 : index
    %21 = vector.load %arg1[%c1_27, %c0_28, %c18_29] : memref<2x16x512xbf16, #tpu.memory_space<vmem>>, vector<1x16x384xbf16>
    %22 = vector.shape_cast %21 : vector<1x16x384xbf16> to vector<16x384xbf16>
    %c48_30 = arith.constant 48 : index
    %c384_31 = arith.constant 384 : index
    %23 = vector.load %arg5[%c48_30, %c384_31] : memref<144x768xbf16, #tpu.memory_space<vmem>>, vector<16x384xbf16>
    tpu.vector_store %arg5[%c48_30, %c384_31], %22 {strides = array<i32>} : memref<144x768xbf16, #tpu.memory_space<vmem>>, vector<16x384xbf16>,
    %c0_32 = arith.constant 0 : index
    %c0_33 = arith.constant 0 : index
    %c19 = arith.constant 19 : index
    %24 = vector.load %arg1[%c0_32, %c0_33, %c19] : memref<2x16x512xbf16, #tpu.memory_space<vmem>>, vector<1x16x384xbf16>
    %25 = vector.shape_cast %24 : vector<1x16x384xbf16> to vector<16x384xbf16>
    %c64 = arith.constant 64 : index
    %c0_34 = arith.constant 0 : index
    %26 = vector.load %arg5[%c64, %c0_34] : memref<144x768xbf16, #tpu.memory_space<vmem>>, vector<16x384xbf16>
    tpu.vector_store %arg5[%c64, %c0_34], %25 {strides = array<i32>} : memref<144x768xbf16, #tpu.memory_space<vmem>>, vector<16x384xbf16>,
    %c1_35 = arith.constant 1 : index
    %c0_36 = arith.constant 0 : index
    %c19_37 = arith.constant 19 : index
    %27 = vector.load %arg1[%c1_35, %c0_36, %c19_37] : memref<2x16x512xbf16, #tpu.memory_space<vmem>>, vector<1x16x384xbf16>
    %28 = vector.shape_cast %27 : vector<1x16x384xbf16> to vector<16x384xbf16>
    %c64_38 = arith.constant 64 : index
    %c384_39 = arith.constant 384 : index
    %29 = vector.load %arg5[%c64_38, %c384_39] : memref<144x768xbf16, #tpu.memory_space<vmem>>, vector<16x384xbf16>
    tpu.vector_store %arg5[%c64_38, %c384_39], %28 {strides = array<i32>} : memref<144x768xbf16, #tpu.memory_space<vmem>>, vector<16x384xbf16>,
    %c0_40 = arith.constant 0 : index
    %c0_41 = arith.constant 0 : index
    %c20 = arith.constant 20 : index
    %30 = vector.load %arg1[%c0_40, %c0_41, %c20] : memref<2x16x512xbf16, #tpu.memory_space<vmem>>, vector<1x16x384xbf16>
    %31 = vector.shape_cast %30 : vector<1x16x384xbf16> to vector<16x384xbf16>
    %c80 = arith.constant 80 : index
    %c0_42 = arith.constant 0 : index
    %32 = vector.load %arg5[%c80, %c0_42] : memref<144x768xbf16, #tpu.memory_space<vmem>>, vector<16x384xbf16>
    tpu.vector_store %arg5[%c80, %c0_42], %31 {strides = array<i32>} : memref<144x768xbf16, #tpu.memory_space<vmem>>, vector<16x384xbf16>,
    %c1_43 = arith.constant 1 : index
    %c0_44 = arith.constant 0 : index
    %c20_45 = arith.constant 20 : index
    %33 = vector.load %arg1[%c1_43, %c0_44, %c20_45] : memref<2x16x512xbf16, #tpu.memory_space<vmem>>, vector<1x16x384xbf16>
    %34 = vector.shape_cast %33 : vector<1x16x384xbf16> to vector<16x384xbf16>
    %c80_46 = arith.constant 80 : index
    %c384_47 = arith.constant 384 : index
    %35 = vector.load %arg5[%c80_46, %c384_47] : memref<144x768xbf16, #tpu.memory_space<vmem>>, vector<16x384xbf16>
    tpu.vector_store %arg5[%c80_46, %c384_47], %34 {strides = array<i32>} : memref<144x768xbf16, #tpu.memory_space<vmem>>, vector<16x384xbf16>,
    %c0_48 = arith.constant 0 : index
    %c0_49 = arith.constant 0 : index
    %c36 = arith.constant 36 : index
    %36 = vector.load %arg1[%c0_48, %c0_49, %c36] : memref<2x16x512xbf16, #tpu.memory_space<vmem>>, vector<1x16x384xbf16>
    %37 = vector.shape_cast %36 : vector<1x16x384xbf16> to vector<16x384xbf16>
    %c96 = arith.constant 96 : index
    %c0_50 = arith.constant 0 : index
    %38 = vector.load %arg5[%c96, %c0_50] : memref<144x768xbf16, #tpu.memory_space<vmem>>, vector<16x384xbf16>
    tpu.vector_store %arg5[%c96, %c0_50], %37 {strides = array<i32>} : memref<144x768xbf16, #tpu.memory_space<vmem>>, vector<16x384xbf16>,
    %c1_51 = arith.constant 1 : index
    %c0_52 = arith.constant 0 : index
    %c36_53 = arith.constant 36 : index
    %39 = vector.load %arg1[%c1_51, %c0_52, %c36_53] : memref<2x16x512xbf16, #tpu.memory_space<vmem>>, vector<1x16x384xbf16>
    %40 = vector.shape_cast %39 : vector<1x16x384xbf16> to vector<16x384xbf16>
    %c96_54 = arith.constant 96 : index
    %c384_55 = arith.constant 384 : index
    %41 = vector.load %arg5[%c96_54, %c384_55] : memref<144x768xbf16, #tpu.memory_space<vmem>>, vector<16x384xbf16>
    tpu.vector_store %arg5[%c96_54, %c384_55], %40 {strides = array<i32>} : memref<144x768xbf16, #tpu.memory_space<vmem>>, vector<16x384xbf16>,
    %c0_56 = arith.constant 0 : index
    %c0_57 = arith.constant 0 : index
    %c37 = arith.constant 37 : index
    %42 = vector.load %arg1[%c0_56, %c0_57, %c37] : memref<2x16x512xbf16, #tpu.memory_space<vmem>>, vector<1x16x384xbf16>
    %43 = vector.shape_cast %42 : vector<1x16x384xbf16> to vector<16x384xbf16>
    %c112 = arith.constant 112 : index
    %c0_58 = arith.constant 0 : index
    %44 = vector.load %arg5[%c112, %c0_58] : memref<144x768xbf16, #tpu.memory_space<vmem>>, vector<16x384xbf16>
    tpu.vector_store %arg5[%c112, %c0_58], %43 {strides = array<i32>} : memref<144x768xbf16, #tpu.memory_space<vmem>>, vector<16x384xbf16>,
    %c1_59 = arith.constant 1 : index
    %c0_60 = arith.constant 0 : index
    %c37_61 = arith.constant 37 : index
    %45 = vector.load %arg1[%c1_59, %c0_60, %c37_61] : memref<2x16x512xbf16, #tpu.memory_space<vmem>>, vector<1x16x384xbf16>
    %46 = vector.shape_cast %45 : vector<1x16x384xbf16> to vector<16x384xbf16>
    %c112_62 = arith.constant 112 : index
    %c384_63 = arith.constant 384 : index
    %47 = vector.load %arg5[%c112_62, %c384_63] : memref<144x768xbf16, #tpu.memory_space<vmem>>, vector<16x384xbf16>
    tpu.vector_store %arg5[%c112_62, %c384_63], %46 {strides = array<i32>} : memref<144x768xbf16, #tpu.memory_space<vmem>>, vector<16x384xbf16>,
    %c0_64 = arith.constant 0 : index
    %c0_65 = arith.constant 0 : index
    %c38 = arith.constant 38 : index
    %48 = vector.load %arg1[%c0_64, %c0_65, %c38] : memref<2x16x512xbf16, #tpu.memory_space<vmem>>, vector<1x16x384xbf16>
    %49 = vector.shape_cast %48 : vector<1x16x384xbf16> to vector<16x384xbf16>
    %c128 = arith.constant 128 : index
    %c0_66 = arith.constant 0 : index
    %50 = vector.load %arg5[%c128, %c0_66] : memref<144x768xbf16, #tpu.memory_space<vmem>>, vector<16x384xbf16>
    tpu.vector_store %arg5[%c128, %c0_66], %49 {strides = array<i32>} : memref<144x768xbf16, #tpu.memory_space<vmem>>, vector<16x384xbf16>,
    %c1_67 = arith.constant 1 : index
    %c0_68 = arith.constant 0 : index
    %c38_69 = arith.constant 38 : index
    %51 = vector.load %arg1[%c1_67, %c0_68, %c38_69] : memref<2x16x512xbf16, #tpu.memory_space<vmem>>, vector<1x16x384xbf16>
    %52 = vector.shape_cast %51 : vector<1x16x384xbf16> to vector<16x384xbf16>
    %c128_70 = arith.constant 128 : index
    %c384_71 = arith.constant 384 : index
    %53 = vector.load %arg5[%c128_70, %c384_71] : memref<144x768xbf16, #tpu.memory_space<vmem>>, vector<16x384xbf16>
    tpu.vector_store %arg5[%c128_70, %c384_71], %52 {strides = array<i32>} : memref<144x768xbf16, #tpu.memory_space<vmem>>, vector<16x384xbf16>,
    %c0_72 = arith.constant 0 : index
    %c0_73 = arith.constant 0 : index
    %54 = vector.load %arg2[%c0_72, %c0_73] : memref<16x144xbf16, #tpu.memory_space<vmem>>, vector<16x144xbf16>
    %c0_74 = arith.constant 0 : index
    %c0_75 = arith.constant 0 : index
    %55 = vector.load %arg5[%c0_74, %c0_75] : memref<144x768xbf16, #tpu.memory_space<vmem>>, vector<144x768xbf16>
    %cst = arith.constant dense<0.000000e+00> : vector<16x768xf32>
    %56 = tpu.matmul %54, %55, %cst {dimension_numbers = #tpu.dot_dimension_numbers<[1], [0], [0], [1], [0, 0, 1, 1], [], []>} : vector<16x144xbf16>, vector<144x768xbf16>, vector<16x768xf32> -> vector<16x768xf32>
    %c0_76 = arith.constant 0 : index
    %c0_77 = arith.constant 0 : index
    %57 = vector.load %arg3[%c0_76, %c0_77] : memref<16x1xf32, #tpu.memory_space<vmem>>, vector<16x1xf32>
    %58 = vector.broadcast %57 : vector<16x1xf32> to vector<16x768xf32>
    %59 = arith.addf %56, %58 : vector<16x768xf32>
    %c0_78 = arith.constant 0 : index
    %c0_79 = arith.constant 0 : index
    %c0_80 = arith.constant 0 : index
    %60 = vector.load %arg4[%c0_78, %c0_79, %c0_80] : memref<1x16x768xf32, #tpu.memory_space<vmem>>, vector<1x16x768xf32>
    %61 = vector.shape_cast %60 : vector<1x16x768xf32> to vector<16x768xf32>
    %62 = vector.shape_cast %59 : vector<16x768xf32> to vector<1x16x768xf32>
    tpu.vector_store %arg4[%c0_78, %c0_79, %c0_80], %62 {strides = array<i32>} : memref<1x16x768xf32, #tpu.memory_space<vmem>>, vector<1x16x768xf32>,
    return
  }
  func.func @transform_0(%arg0: i32) -> (i32, i32, i32) {
    %c0_i32 = arith.constant 0 : i32
    %c0_i32_0 = arith.constant 0 : i32
    %c0_i32_1 = arith.constant 0 : i32
    return %arg0, %c0_i32, %c0_i32_0 : i32, i32, i32
  }
  func.func @transform_1(%arg0: i32) -> (i32, i32) {
    %c0_i32 = arith.constant 0 : i32
    %c0_i32_0 = arith.constant 0 : i32
    %c0_i32_1 = arith.constant 0 : i32
    return %c0_i32, %c0_i32_0 : i32, i32
  }
  func.func @transform_2(%arg0: i32) -> (i32, i32) {
    %c0_i32 = arith.constant 0 : i32
    %c0_i32_0 = arith.constant 0 : i32
    %c0_i32_1 = arith.constant 0 : i32
    return %c0_i32, %c0_i32_0 : i32, i32
  }
  func.func @transform_3(%arg0: i32) -> (i32, i32, i32) {
    %c0_i32 = arith.constant 0 : i32
    %c0_i32_0 = arith.constant 0 : i32
    %c0_i32_1 = arith.constant 0 : i32
    return %arg0, %c0_i32, %c0_i32_0 : i32, i32, i32
  }
}

</mosaic_0001>

<bundles_post_ra>
// kernel: tpu_custom_call.1
= control target key start
LH: loop header
LB: loop body
LE: loop exit
PB: predicated region body
PF: predicated region fallthrough
CT: control target
= control target key end

     0   :  { %8 = vsyncpa [#allocation4], 0  ;;  %s1576_s0 = inlined_call_operand.hbm [shape: bf16[2,16,512], index: 0, kind: input, shape index: {}]   ;;  %s1577_s1 = inlined_call_operand.vmem [shape: bf16[16,144], index: 1, kind: input, shape index: {}]   ;;  %s1578_s2 = inlined_call_operand.vmem [shape: f32[16,1], index: 2, kind: input, shape index: {}]   ;;  %s1579_s3 = inlined_call_operand.hbm [shape: f32[1,16,768], index: 3, kind: output, shape index: {}]  }
   0x1   :  { %9 = vsyncpa [#allocation5], 0  ;;  %s1288_s12 = smov [#allocation3]  }
   0x2   :  { %s15_s13 = sshll.u32 %s1288_s12, 4  ;;  %s16_s13 = int_to_ptr.vmem [resolvable:$true] %s15_s13 }
   0x3   :  { %s1252_s14 = scalar_lea.vmem %s16_s13, 1024  ;;  %p1257_p1 = scmp.lt.s32.totalorder %s16_s13, %s16_s13 }
   0x4   :  { %p1253_p0 = scmp.ne.s32.totalorder %s16_s13, %s1252_s14  ;;  %p1258_p2 = scmp.lt.s32.totalorder %s1252_s14, %s1252_s14 }
   0x6   :  { %p1259_p3 = por %p1258_p2, %p1257_p1 }
   0x8   :  { %p1260_p4 = pnand %p1259_p3, %p1253_p0 }
   0xa   :  { %1263 = shalt.err (!%p1260_p4)
}
   0xb   :  { %s1289_s15 = smov 256   ;;  %s1290_s16 = smov 16  }
   0xc   :  { %21 = dma.hbm_to_vmem [thread:$0]  %s1576_s0, 1024, %s16_s13, [#allocation4], %s1289_s15, %s1289_s15, %s1290_s16  }
   0xd   :  { %1284 = dma.done.wait [#allocation4], 1024  }
   0xe   :  { %1285 = vsyncadd [#allocation4], 4294966272  ;;  %v1326_v0 = vld [vmem:[#allocation3 + $0x10] sm:$0xff]  ;;  %v1328_v1 = vld [vmem:[#allocation3] sm:$0xff]  ;;  %s1291_s19 = smov 91   ;;  %s1292_s0 = smov 92  }
   0xf   :  { %474 = vrot.lane.b32.xlu1 %v1326_v0, %s1291_s19  ;;  %470 = vrot.lane.b32.xlu0 %v1328_v1, %s1291_s19  ;;  %v465_v2 = vld [vmem:[#allocation3 + $0x18] sm:$0xff]  ;;  %v1334_v3 = vld [vmem:[#allocation3 + $0x20] sm:$0xff]  ;;  %v463_v4 = vld [vmem:[#allocation3 + $0x8] sm:$0xff]  ;;  %s1293_s20 = smov 108   ;;  %s1294_s21 = smov 109   ;;  %v1112_v6 = vcombine.high %v1328_v1, %v1326_v0  ;;  %v1111_v7 = vcombine.low %v1328_v1, %v1326_v0  ;;  %vm947_vm0 = vcmask 130048  }
  0x10   :  { %v1336_v5 = vld [vmem:[#allocation3 + $0x30] sm:$0xff]  ;;  %43 = vst [vmem:[#allocation2 + $0xc] sm:$0xff] %v1334_v3  ;;  %s1295_s22 = smov 110   ;;  %s1296_s23 = smov 126   ;;  %v498_v8 = vld [vmem:[#allocation3 + $0x28] sm:$0xff]  ;;  %v1391_v9 = vld [vmem:[#allocation3 + $0x38] sm:$0xff] }
  0x11   :  { %45 = vst [vmem:[#allocation2 + $0x24] sm:$0xff] %v1336_v5  ;;  %s1297_s24 = smov 127   ;;  %s1298_s25 = smov 90   ;;  %v1396_v10 = vld [vmem:[%s1577_s1 + $0x4] ss:$8 sps:$4 sm:$0xff]   ;;  %vm67_vm1 = vcmask 1043456  }
  0x12   :  { %1165 = vmatprep.mubr.msk.bf16.mxu0 %vm947_vm0, %v1396_v10  ;;  %1166 = vmatprep.mubr.msk.bf16.mxu1 %vm947_vm0, %v1396_v10  ;;  %v31_v11 = vld [vmem:[#allocation3 + $0x8] sm:$0xf]  ;;  %v33_v12 = vld [vmem:[#allocation3 + $0x18] sm:$0xf]  ;;  %vm483_vm2 = vcmask 744448   ;;  %vm414_vm3 = vcmask 752640  }
  0x13   :  { %476 = vrot.lane.b32.xlu1 %v465_v2, %s1291_s19  ;;  %472 = vrot.lane.b32.xlu0 %v463_v4, %s1291_s19  ;;  %v40_v13 = vld [vmem:[#allocation3 + $0x28] sm:$0xf]  ;;  %35 = vst [vmem:[#allocation2 + $0x8] sm:$0xf] %v31_v11  ;;  %37 = vst [vmem:[#allocation2 + $0x20] sm:$0xf] %v33_v12 }
  0x14   :  { %v42_v14 = vld [vmem:[#allocation3 + $0x38] sm:$0xf]  ;;  %44 = vst [vmem:[#allocation2 + $0x14] sm:$0xf] %v40_v13  ;;  %v656_v45 = vld [vmem:[%s1578_s2] sm:$0xff]  ;;  %vm345_vm4 = vcmask 883712  }
  0x15   :  { %46 = vst [vmem:[#allocation2 + $0x2c] sm:$0xf] %v42_v14  ;;  %v657_v44 = vld [vmem:[%s1578_s2 + $0x8] sm:$0xff]  ;;  %v1299_v49 = vmov 0   ;;  %vm276_vm5 = vcmask 891904   ;;  %vm207_vm6 = vcmask 900096  }
  0x16   :  { %1184 = vset.pattern.permute.xlu1 %v1299_v49  ;;  %1183 = vset.pattern.permute.xlu0 %v1299_v49  ;;  %vm138_vm7 = vcmask 1031168   ;;  %vm69_vm8 = vcmask 1039360   ;;  %vm552_vm9 = vcmask 736256  }
  0x17   :  { %403 = vrot.lane.b32.xlu1 %v463_v4, %s1292_s0  ;;  %401 = vrot.lane.b32.xlu0 %v1328_v1, %s1292_s0 }
  0x1b   :  { %407 = vrot.lane.b32.xlu1 %v465_v2, %s1292_s0  ;;  %405 = vrot.lane.b32.xlu0 %v1326_v0, %s1292_s0 }
  0x1f   :  { %334 = vrot.lane.b32.xlu1 %v463_v4, %s1293_s20  ;;  %332 = vrot.lane.b32.xlu0 %v1328_v1, %s1293_s20 }
  0x23   :  { %338 = vrot.lane.b32.xlu1 %v465_v2, %s1293_s20  ;;  %336 = vrot.lane.b32.xlu0 %v1326_v0, %s1293_s20 }
  0x27   :  { %265 = vrot.lane.b32.xlu1 %v463_v4, %s1294_s21  ;;  %263 = vrot.lane.b32.xlu0 %v1328_v1, %s1294_s21 }
  0x2b   :  { %269 = vrot.lane.b32.xlu1 %v465_v2, %s1294_s21  ;;  %267 = vrot.lane.b32.xlu0 %v1326_v0, %s1294_s21 }
  0x2f   :  { %196 = vrot.lane.b32.xlu1 %v463_v4, %s1295_s22  ;;  %194 = vrot.lane.b32.xlu0 %v1328_v1, %s1295_s22 }
  0x33   :  { %200 = vrot.lane.b32.xlu1 %v465_v2, %s1295_s22  ;;  %198 = vrot.lane.b32.xlu0 %v1326_v0, %s1295_s22 }
  0x37   :  { %127 = vrot.lane.b32.xlu1 %v463_v4, %s1296_s23  ;;  %125 = vrot.lane.b32.xlu0 %v1328_v1, %s1296_s23 }
  0x3b   :  { %131 = vrot.lane.b32.xlu1 %v465_v2, %s1296_s23  ;;  %129 = vrot.lane.b32.xlu0 %v1326_v0, %s1296_s23 }
  0x3f   :  { %57 = vrot.lane.b32.xlu1 %v463_v4, %s1297_s24  ;;  %55 = vrot.lane.b32.xlu0 %v1328_v1, %s1297_s24 }
  0x43   :  { %61 = vrot.lane.b32.xlu1 %v465_v2, %s1297_s24  ;;  %59 = vrot.lane.b32.xlu0 %v1326_v0, %s1297_s24 }
  0x47   :  { %541 = vrot.lane.b32.xlu1 %v463_v4, %s1298_s25  ;;  %539 = vrot.lane.b32.xlu0 %v1328_v1, %s1298_s25 }
  0x4b   :  { %545 = vrot.lane.b32.xlu1 %v465_v2, %s1298_s25  ;;  %543 = vrot.lane.b32.xlu0 %v1326_v0, %s1298_s25 }
  0x4f   :  { %507 = vrot.lane.b32.xlu1 %v498_v8, %s1291_s19  ;;  %505 = vrot.lane.b32.xlu0 %v1334_v3, %s1291_s19 }
  0x53   :  { %511 = vrot.lane.b32.xlu1 %v1391_v9, %s1291_s19  ;;  %509 = vrot.lane.b32.xlu0 %v1336_v5, %s1291_s19 }
  0x57   :  { %438 = vrot.lane.b32.xlu1 %v498_v8, %s1292_s0  ;;  %436 = vrot.lane.b32.xlu0 %v1334_v3, %s1292_s0 }
  0x5b   :  { %442 = vrot.lane.b32.xlu1 %v1391_v9, %s1292_s0  ;;  %440 = vrot.lane.b32.xlu0 %v1336_v5, %s1292_s0 }
  0x5f   :  { %369 = vrot.lane.b32.xlu1 %v498_v8, %s1293_s20  ;;  %367 = vrot.lane.b32.xlu0 %v1334_v3, %s1293_s20 }
  0x63   :  { %373 = vrot.lane.b32.xlu1 %v1391_v9, %s1293_s20  ;;  %371 = vrot.lane.b32.xlu0 %v1336_v5, %s1293_s20 }
  0x67   :  { %300 = vrot.lane.b32.xlu1 %v498_v8, %s1294_s21  ;;  %298 = vrot.lane.b32.xlu0 %v1334_v3, %s1294_s21 }
  0x6b   :  { %304 = vrot.lane.b32.xlu1 %v1391_v9, %s1294_s21  ;;  %302 = vrot.lane.b32.xlu0 %v1336_v5, %s1294_s21 }
  0x6f   :  { %231 = vrot.lane.b32.xlu1 %v498_v8, %s1295_s22  ;;  %229 = vrot.lane.b32.xlu0 %v1334_v3, %s1295_s22 }
  0x73   :  { %235 = vrot.lane.b32.xlu1 %v1391_v9, %s1295_s22  ;;  %233 = vrot.lane.b32.xlu0 %v1336_v5, %s1295_s22 }
  0x77   :  { %162 = vrot.lane.b32.xlu1 %v498_v8, %s1296_s23  ;;  %160 = vrot.lane.b32.xlu0 %v1334_v3, %s1296_s23 }
  0x7b   :  { %166 = vrot.lane.b32.xlu1 %v1391_v9, %s1296_s23  ;;  %164 = vrot.lane.b32.xlu0 %v1336_v5, %s1296_s23 }
  0x7f   :  { %93 = vrot.lane.b32.xlu1 %v498_v8, %s1297_s24  ;;  %91 = vrot.lane.b32.xlu0 %v1334_v3, %s1297_s24 }
  0x81   :  { %v475_v15 = vpop.permute.xlu1 %474  ;;  %v471_v16 = vpop.permute.xlu0 %470 }
  0x82   :  { %v480_v19 = vrot.slane %v475_v15, 4  ;;  %v478_v20 = vrot.slane %v471_v16, 4 }
  0x83   :  { %97 = vrot.lane.b32.xlu1 %v1391_v9, %s1297_s24  ;;  %95 = vrot.lane.b32.xlu0 %v1336_v5, %s1297_s24 }
  0x85   :  { %v477_v17 = vpop.permute.xlu1 %476  ;;  %v473_v18 = vpop.permute.xlu0 %472 }
  0x86   :  { %v481_v21 = vrot.slane %v477_v17, 4  ;;  %v479_v22 = vrot.slane %v473_v18, 4 }
  0x87   :  { %576 = vrot.lane.b32.xlu1 %v498_v8, %s1298_s25  ;;  %574 = vrot.lane.b32.xlu0 %v1334_v3, %s1298_s25 }
  0x88   :  { %v486_v23 = vsel %vm67_vm1, %v480_v19, %v481_v21  ;;  %v488_v24 = vsel %vm483_vm2, %v477_v17, %v481_v21  ;;  %v482_v25 = vsel %vm67_vm1, %v478_v20, %v479_v22  ;;  %v485_v26 = vsel %vm483_vm2, %v473_v18, %v479_v22 }
  0x89   :  { %v487_v27 = vsel %vm483_vm2, %v475_v15, %v486_v23  ;;  %496 = vst [vmem:[#allocation2 + $0x170] sm:$0xf] %v488_v24  ;;  %v484_v28 = vsel %vm483_vm2, %v471_v16, %v482_v25  ;;  %494 = vst [vmem:[#allocation2 + $0x158] sm:$0xf] %v485_v26  ;;  %v404_v29 = vpop.permute.xlu1 %403  ;;  %v402_v30 = vpop.permute.xlu0 %401 }
  0x8a   :  { %v410_v31 = vrot.slane %v404_v29, 4  ;;  %v409_v32 = vrot.slane %v402_v30, 4  ;;  %v1154_v33 = vcombine.high %v484_v28, %v487_v27  ;;  %v1153_v34 = vcombine.low %v484_v28, %v487_v27 }
  0x8b   :  { %580 = vrot.lane.b32.xlu1 %v1391_v9, %s1298_s25  ;;  %578 = vrot.lane.b32.xlu0 %v1336_v5, %s1298_s25 }
  0x8c   :  { %v416_v35 = vsel %vm414_vm3, %v404_v29, %v410_v31  ;;  %v413_v36 = vsel %vm67_vm1, %v409_v32, %v410_v31  ;;  %951 = vmatprep.subr.bf16.mxu0 %v1154_v33 }
  0x8d   :  { %425 = vst [vmem:[#allocation2 + $0x128] sm:$0xf] %v416_v35  ;;  %v415_v37 = vsel %vm414_vm3, %v402_v30, %v413_v36  ;;  %v408_v38 = vpop.permute.xlu1 %407  ;;  %v406_v39 = vpop.permute.xlu0 %405  ;;  %952 = vmatpush1.bf16.msra.mxu0 %v1153_v34 }
  0x8e   :  { %v412_v40 = vrot.slane %v408_v38, 4  ;;  %v411_v41 = vrot.slane %v406_v39, 4 }
  0x8f   :  { %665 = vperm.xlu1 %1184, %v657_v44   ;;  %660 = vperm.xlu0 %1183, %v656_v45  }
  0x90   :  { %v419_v42 = vsel %vm414_vm3, %v408_v38, %v412_v40  ;;  %v417_v43 = vsel %vm67_vm1, %v411_v41, %v412_v40 }
  0x91   :  { %427 = vst [vmem:[#allocation2 + $0x140] sm:$0xf] %v419_v42  ;;  %v418_v46 = vsel %vm414_vm3, %v406_v39, %v417_v43  ;;  %v335_v47 = vpop.permute.xlu1 %334  ;;  %v333_v48 = vpop.permute.xlu0 %332 }
  0x92   :  { %v341_v50 = vrot.slane %v335_v47, 4  ;;  %v340_v51 = vrot.slane %v333_v48, 4  ;;  %v1148_v52 = vcombine.high %v415_v37, %v418_v46  ;;  %v1147_v53 = vcombine.low %v415_v37, %v418_v46 }
  0x94   :  { %v347_v54 = vsel %vm345_vm4, %v335_v47, %v341_v50  ;;  %v344_v55 = vsel %vm67_vm1, %v340_v51, %v341_v50  ;;  %953 = vmatprep.subr.bf16.mxu0 %v1148_v52 }
  0x95   :  { %356 = vst [vmem:[#allocation2 + $0xf8] sm:$0xf] %v347_v54  ;;  %v346_v56 = vsel %vm345_vm4, %v333_v48, %v344_v55  ;;  %v339_v57 = vpop.permute.xlu1 %338  ;;  %v337_v58 = vpop.permute.xlu0 %336  ;;  %954 = vmatpush1.bf16.msra.mxu0 %v1147_v53 }
  0x96   :  { %v343_v59 = vrot.slane %v339_v57, 4  ;;  %v342_v60 = vrot.slane %v337_v58, 4 }
  0x98   :  { %v350_v61 = vsel %vm345_vm4, %v339_v57, %v343_v59  ;;  %v348_v62 = vsel %vm67_vm1, %v342_v60, %v343_v59 }
  0x99   :  { %358 = vst [vmem:[#allocation2 + $0x110] sm:$0xf] %v350_v61  ;;  %v349_v63 = vsel %vm345_vm4, %v337_v58, %v348_v62  ;;  %v266_v2 = vpop.permute.xlu1 %265  ;;  %v264_v3 = vpop.permute.xlu0 %263 }
  0x9a   :  { %v272_v4 = vrot.slane %v266_v2, 4  ;;  %v271_v5 = vrot.slane %v264_v3, 4  ;;  %v1142_v8 = vcombine.high %v346_v56, %v349_v63  ;;  %v1141_v9 = vcombine.low %v346_v56, %v349_v63 }
  0x9c   :  { %v278_v11 = vsel %vm276_vm5, %v266_v2, %v272_v4  ;;  %v275_v12 = vsel %vm67_vm1, %v271_v5, %v272_v4  ;;  %955 = vmatprep.subr.bf16.mxu0 %v1142_v8 }
  0x9d   :  { %287 = vst [vmem:[#allocation2 + $0xc8] sm:$0xf] %v278_v11  ;;  %v277_v13 = vsel %vm276_vm5, %v264_v3, %v275_v12  ;;  %v270_v14 = vpop.permute.xlu1 %269  ;;  %v268_v15 = vpop.permute.xlu0 %267  ;;  %956 = vmatpush1.bf16.msra.mxu0 %v1141_v9 }
  0x9e   :  { %v274_v16 = vrot.slane %v270_v14, 4  ;;  %v273_v17 = vrot.slane %v268_v15, 4 }
  0xa0   :  { %v281_v18 = vsel %vm276_vm5, %v270_v14, %v274_v16  ;;  %v279_v19 = vsel %vm67_vm1, %v273_v17, %v274_v16 }
  0xa1   :  { %289 = vst [vmem:[#allocation2 + $0xe0] sm:$0xf] %v281_v18  ;;  %v280_v20 = vsel %vm276_vm5, %v268_v15, %v279_v19  ;;  %v197_v21 = vpop.permute.xlu1 %196  ;;  %v195_v22 = vpop.permute.xlu0 %194 }
  0xa2   :  { %v203_v23 = vrot.slane %v197_v21, 4  ;;  %v202_v24 = vrot.slane %v195_v22, 4  ;;  %v1136_v25 = vcombine.high %v277_v13, %v280_v20  ;;  %v1135_v26 = vcombine.low %v277_v13, %v280_v20 }
  0xa4   :  { %v209_v27 = vsel %vm207_vm6, %v197_v21, %v203_v23  ;;  %v206_v28 = vsel %vm67_vm1, %v202_v24, %v203_v23  ;;  %957 = vmatprep.subr.bf16.mxu0 %v1136_v25 }
  0xa5   :  { %218 = vst [vmem:[#allocation2 + $0x98] sm:$0xf] %v209_v27  ;;  %v208_v29 = vsel %vm207_vm6, %v195_v22, %v206_v28  ;;  %v201_v30 = vpop.permute.xlu1 %200  ;;  %v199_v31 = vpop.permute.xlu0 %198  ;;  %958 = vmatpush1.bf16.msra.mxu0 %v1135_v26 }
  0xa6   :  { %v205_v32 = vrot.slane %v201_v30, 4  ;;  %v204_v33 = vrot.slane %v199_v31, 4 }
  0xa8   :  { %v212_v34 = vsel %vm207_vm6, %v201_v30, %v205_v32  ;;  %v210_v35 = vsel %vm67_vm1, %v204_v33, %v205_v32  ;;  %v1520_v33 = vld [vmem:[%s1577_s1] ss:$8 sps:$4 sm:$0xff]   ;;  %s1300_s1 = smov [#allocation6]  }
  0xa9   :  { %220 = vst [vmem:[#allocation2 + $0xb0] sm:$0xf] %v212_v34  ;;  %v211_v36 = vsel %vm207_vm6, %v199_v31, %v210_v35  ;;  %v128_v37 = vpop.permute.xlu1 %127  ;;  %v126_v38 = vpop.permute.xlu0 %125  ;;  %s1097_s6 = sshll.u32 %s1300_s1, 4  ;;  %s1098_s6 = int_to_ptr.vmem [resolvable:$true] %s1097_s6 }
  0xaa   :  { %v134_v39 = vrot.slane %v128_v37, 4  ;;  %v133_v40 = vrot.slane %v126_v38, 4  ;;  %v1130_v41 = vcombine.high %v208_v29, %v211_v36  ;;  %v1129_v42 = vcombine.low %v208_v29, %v211_v36  ;;  %s1264_s7 = scalar_lea.vmem %s1098_s6, 1536  ;;  %p1269_p6 = scmp.lt.s32.totalorder %s1098_s6, %s1098_s6 }
  0xab   :  { %p1265_p5 = scmp.ne.s32.totalorder %s1098_s6, %s1264_s7  ;;  %p1270_p7 = scmp.lt.s32.totalorder %s1264_s7, %s1264_s7 }
  0xac   :  { %v140_v43 = vsel %vm138_vm7, %v128_v37, %v134_v39  ;;  %v137_v44 = vsel %vm67_vm1, %v133_v40, %v134_v39  ;;  %959 = vmatprep.subr.bf16.mxu0 %v1130_v41 }
  0xad   :  { %149 = vst [vmem:[#allocation2 + $0x68] sm:$0xf] %v140_v43  ;;  %v139_v45 = vsel %vm138_vm7, %v126_v38, %v137_v44  ;;  %v132_v46 = vpop.permute.xlu1 %131  ;;  %v130_v47 = vpop.permute.xlu0 %129  ;;  %960 = vmatpush1.bf16.msra.mxu0 %v1129_v42  ;;  %p1271_p8 = por %p1270_p7, %p1269_p6 }
  0xae   :  { %v136_v48 = vrot.slane %v132_v46, 4  ;;  %v135_v49 = vrot.slane %v130_v47, 4 }
  0xaf   :  { %p1272_p9 = pnand %p1271_p8, %p1265_p5 }
  0xb0   :  { %v143_v50 = vsel %vm138_vm7, %v132_v46, %v136_v48  ;;  %v141_v51 = vsel %vm67_vm1, %v135_v49, %v136_v48 }
  0xb1   :  { %151 = vst [vmem:[#allocation2 + $0x80] sm:$0xf] %v143_v50  ;;  %v142_v52 = vsel %vm138_vm7, %v130_v47, %v141_v51  ;;  %v58_v53 = vpop.permute.xlu1 %57  ;;  %v56_v54 = vpop.permute.xlu0 %55 }
  0xb2   :  { %v64_v55 = vrot.slane %v58_v53, 4  ;;  %v63_v56 = vrot.slane %v56_v54, 4  ;;  %v1124_v57 = vcombine.high %v139_v45, %v142_v52  ;;  %v1123_v58 = vcombine.low %v139_v45, %v142_v52 }
  0xb4   :  { %v71_v59 = vsel %vm69_vm8, %v58_v53, %v64_v55  ;;  %v68_v60 = vsel %vm67_vm1, %v63_v56, %v64_v55  ;;  %961 = vmatprep.subr.bf16.mxu0 %v1124_v57 }
  0xb5   :  { %80 = vst [vmem:[#allocation2 + $0x38] sm:$0xf] %v71_v59  ;;  %v70_v61 = vsel %vm69_vm8, %v56_v54, %v68_v60  ;;  %v62_v62 = vpop.permute.xlu1 %61  ;;  %v60_v63 = vpop.permute.xlu0 %59  ;;  %962 = vmatpush1.bf16.msra.mxu0 %v1123_v58  ;;  %v1194_v59 = vld [vmem:[#allocation2 + $0x158] ss:$24 sps:$4 sm:$0xff]  }
  0xb6   :  { %v66_v2 = vrot.slane %v62_v62, 4  ;;  %v65_v3 = vrot.slane %v60_v63, 4 }
  0xb8   :  { %v74_v4 = vsel %vm69_vm8, %v62_v62, %v66_v2  ;;  %v72_v5 = vsel %vm67_vm1, %v65_v3, %v66_v2 }
  0xb9   :  { %82 = vst [vmem:[#allocation2 + $0x50] sm:$0xf] %v74_v4  ;;  %v73_v8 = vsel %vm69_vm8, %v60_v63, %v72_v5  ;;  %v542_v9 = vpop.permute.xlu1 %541  ;;  %v540_v11 = vpop.permute.xlu0 %539 }
  0xba   :  { %v548_v12 = vrot.slane %v542_v9, 4  ;;  %v547_v13 = vrot.slane %v540_v11, 4  ;;  %v1118_v14 = vcombine.high %v70_v61, %v73_v8  ;;  %v1117_v15 = vcombine.low %v70_v61, %v73_v8 }
  0xbc   :  { %v554_v16 = vsel %vm552_vm9, %v542_v9, %v548_v12  ;;  %v551_v17 = vsel %vm67_vm1, %v547_v13, %v548_v12  ;;  %963 = vmatprep.subr.bf16.mxu0 %v1118_v14 }
  0xbd   :  { %563 = vst [vmem:[#allocation2 + $0x188] sm:$0xf] %v554_v16  ;;  %v553_v18 = vsel %vm552_vm9, %v540_v11, %v551_v17  ;;  %v546_v19 = vpop.permute.xlu1 %545  ;;  %v544_v20 = vpop.permute.xlu0 %543  ;;  %964 = vmatpush1.bf16.msra.mxu0 %v1117_v15 }
  0xbe   :  { %v550_v21 = vrot.slane %v546_v19, 4  ;;  %v549_v22 = vrot.slane %v544_v20, 4  ;;  %965 = vmatprep.subr.bf16.mxu0 %v1112_v6 }
  0xc0   :  { %v557_v23 = vsel %vm552_vm9, %v546_v19, %v550_v21  ;;  %v555_v24 = vsel %vm67_vm1, %v549_v22, %v550_v21 }
  0xc1   :  { %565 = vst [vmem:[#allocation2 + $0x1a0] sm:$0xf] %v557_v23  ;;  %v556_v25 = vsel %vm552_vm9, %v544_v20, %v555_v24  ;;  %v508_v26 = vpop.permute.xlu1 %507  ;;  %v506_v27 = vpop.permute.xlu0 %505  ;;  %966 = vmatpush1.bf16.msra.mxu0 %v1111_v7 }
  0xc2   :  { %v514_v28 = vrot.slane %v508_v26, 4  ;;  %v513_v29 = vrot.slane %v506_v27, 4  ;;  %v1160_v30 = vcombine.high %v553_v18, %v556_v25  ;;  %v1159_v31 = vcombine.low %v553_v18, %v556_v25  ;;  %v1201_v18 = vld [vmem:[#allocation2 + $0x128] ss:$24 sps:$4 sm:$0xff]  }
  0xc4   :  { %v519_v32 = vsel %vm483_vm2, %v508_v26, %v514_v28  ;;  %v517_v6 = vsel %vm67_vm1, %v513_v29, %v514_v28  ;;  %981 = vmatprep.subr.bf16.mxu0 %v1160_v30 }
  0xc5   :  { %528 = vst [vmem:[#allocation2 + $0x164] sm:$0xf] %v519_v32  ;;  %v518_v34 = vsel %vm483_vm2, %v506_v27, %v517_v6  ;;  %v512_v35 = vpop.permute.xlu1 %511  ;;  %v510_v0 = vpop.permute.xlu0 %509  ;;  %982 = vmatpush2.bf16.msra.mxu0 %v1159_v31 }
  0xc6   :  { %527 = vst [vmem:[#allocation2 + $0x15c] sm:$0xff] %v518_v34  ;;  %v516_v1 = vrot.slane %v512_v35, 4  ;;  %v515_v7 = vrot.slane %v510_v0, 4 }
  0xc8   :  { %v522_v36 = vsel %vm483_vm2, %v512_v35, %v516_v1  ;;  %v520_v37 = vsel %vm67_vm1, %v515_v7, %v516_v1  ;;  %984 = vmatmul.mubr.bf16.vlgmr.msra.gmra.mxu0 %v1520_v33 }
  0xc9   :  { %530 = vst [vmem:[#allocation2 + $0x17c] sm:$0xf] %v522_v36  ;;  %v521_v38 = vsel %vm483_vm2, %v510_v0, %v520_v37  ;;  %v439_v39 = vpop.permute.xlu1 %438  ;;  %v437_v40 = vpop.permute.xlu0 %436  ;;  %1167 = vmatprep.mubr.msk.bf16.mxu0 %vm947_vm0, %v1396_v10  ;;  %v1207_v0 = vld [vmem:[#allocation2 + $0xf8] ss:$24 sps:$4 sm:$0xff]  }
  0xca   :  { %529 = vst [vmem:[#allocation2 + $0x174] sm:$0xff] %v521_v38  ;;  %v445_v41 = vrot.slane %v439_v39, 4  ;;  %v444_v42 = vrot.slane %v437_v40, 4 }
  0xcc   :  { %v450_v43 = vsel %vm414_vm3, %v439_v39, %v445_v41  ;;  %v448_v44 = vsel %vm67_vm1, %v444_v42, %v445_v41 }
  0xcd   :  { %459 = vst [vmem:[#allocation2 + $0x134] sm:$0xf] %v450_v43  ;;  %v449_v45 = vsel %vm414_vm3, %v437_v40, %v448_v44  ;;  %v443_v46 = vpop.permute.xlu1 %442  ;;  %v441_v47 = vpop.permute.xlu0 %440 }
  0xce   :  { %458 = vst [vmem:[#allocation2 + $0x12c] sm:$0xff] %v449_v45  ;;  %v447_v48 = vrot.slane %v443_v46, 4  ;;  %v446_v49 = vrot.slane %v441_v47, 4 }
  0xd0   :  { %v453_v50 = vsel %vm414_vm3, %v443_v46, %v447_v48  ;;  %v451_v51 = vsel %vm67_vm1, %v446_v49, %v447_v48  ;;  %v1193_v58 = vld [vmem:[#allocation2 + $0x164] ss:$24 sps:$4 sm:$0xff]  }
  0xd1   :  { %461 = vst [vmem:[#allocation2 + $0x14c] sm:$0xf] %v453_v50  ;;  %v452_v10 = vsel %vm414_vm3, %v441_v47, %v451_v51  ;;  %v370_v52 = vpop.permute.xlu1 %369  ;;  %v368_v53 = vpop.permute.xlu0 %367  ;;  %v1189_v54 = vld [vmem:[#allocation2 + $0x15c] ss:$24 sps:$4 sm:$0xff]   ;;  %v1191_v57 = vld [vmem:[#allocation2 + $0x160] ss:$24 sps:$4 sm:$0xff]   ;;  %1037 = vmatprep.subr.bf16.mxu0 %v1193_v58 }
  0xd2   :  { %460 = vst [vmem:[#allocation2 + $0x144] sm:$0xff] %v452_v10  ;;  %v376_v55 = vrot.slane %v370_v52, 4  ;;  %v375_v56 = vrot.slane %v368_v53, 4  ;;  %994 = vmatprep.subr.bf16.mxu1 %v1189_v54  ;;  %1038 = vmatpush1.bf16.msra.mxu0 %v1191_v57  ;;  %v1213_v51 = vld [vmem:[#allocation2 + $0xc8] ss:$24 sps:$4 sm:$0xff]  }
  0xd3   :  { %995 = vmatpush1.bf16.msra.mxu1 %v1194_v59 }
  0xd4   :  { %v381_v60 = vsel %vm345_vm4, %v370_v52, %v376_v55  ;;  %v379_v61 = vsel %vm67_vm1, %v375_v56, %v376_v55 }
  0xd5   :  { %390 = vst [vmem:[#allocation2 + $0x104] sm:$0xf] %v381_v60  ;;  %v380_v62 = vsel %vm345_vm4, %v368_v53, %v379_v61  ;;  %v374_v63 = vpop.permute.xlu1 %373  ;;  %v372_v2 = vpop.permute.xlu0 %371 }
  0xd6   :  { %389 = vst [vmem:[#allocation2 + $0xfc] sm:$0xff] %v380_v62  ;;  %v378_v3 = vrot.slane %v374_v63, 4  ;;  %v377_v4 = vrot.slane %v372_v2, 4 }
  0xd8   :  { %v384_v5 = vsel %vm345_vm4, %v374_v63, %v378_v3  ;;  %v382_v8 = vsel %vm67_vm1, %v377_v4, %v378_v3  ;;  %v1200_v17 = vld [vmem:[#allocation2 + $0x134] ss:$24 sps:$4 sm:$0xff]  }
  0xd9   :  { %392 = vst [vmem:[#allocation2 + $0x11c] sm:$0xf] %v384_v5  ;;  %v383_v9 = vsel %vm345_vm4, %v372_v2, %v382_v8  ;;  %v301_v11 = vpop.permute.xlu1 %300  ;;  %v299_v12 = vpop.permute.xlu0 %298  ;;  %v1196_v13 = vld [vmem:[#allocation2 + $0x12c] ss:$24 sps:$4 sm:$0xff]   ;;  %v1198_v16 = vld [vmem:[#allocation2 + $0x130] ss:$24 sps:$4 sm:$0xff]   ;;  %1039 = vmatprep.subr.bf16.mxu0 %v1200_v17 }
  0xda   :  { %391 = vst [vmem:[#allocation2 + $0x114] sm:$0xff] %v383_v9  ;;  %v307_v14 = vrot.slane %v301_v11, 4  ;;  %v306_v15 = vrot.slane %v299_v12, 4  ;;  %996 = vmatprep.subr.bf16.mxu1 %v1196_v13  ;;  %1040 = vmatpush1.bf16.msra.mxu0 %v1198_v16  ;;  %v1219_v8 = vld [vmem:[#allocation2 + $0x98] ss:$24 sps:$4 sm:$0xff]  }
  0xdb   :  { %997 = vmatpush1.bf16.msra.mxu1 %v1201_v18 }
  0xdc   :  { %v312_v19 = vsel %vm276_vm5, %v301_v11, %v307_v14  ;;  %v310_v20 = vsel %vm67_vm1, %v306_v15, %v307_v14 }
  0xdd   :  { %321 = vst [vmem:[#allocation2 + $0xd4] sm:$0xf] %v312_v19  ;;  %v311_v21 = vsel %vm276_vm5, %v299_v12, %v310_v20  ;;  %v305_v22 = vpop.permute.xlu1 %304  ;;  %v303_v23 = vpop.permute.xlu0 %302 }
  0xde   :  { %320 = vst [vmem:[#allocation2 + $0xcc] sm:$0xff] %v311_v21  ;;  %v309_v24 = vrot.slane %v305_v22, 4  ;;  %v308_v25 = vrot.slane %v303_v23, 4 }
  0xe0   :  { %v315_v26 = vsel %vm276_vm5, %v305_v22, %v309_v24  ;;  %v313_v27 = vsel %vm67_vm1, %v308_v25, %v309_v24  ;;  %v1206_v35 = vld [vmem:[#allocation2 + $0x104] ss:$24 sps:$4 sm:$0xff]  }
  0xe1   :  { %323 = vst [vmem:[#allocation2 + $0xec] sm:$0xf] %v315_v26  ;;  %v314_v28 = vsel %vm276_vm5, %v303_v23, %v313_v27  ;;  %v232_v29 = vpop.permute.xlu1 %231  ;;  %v230_v30 = vpop.permute.xlu0 %229  ;;  %v1202_v31 = vld [vmem:[#allocation2 + $0xfc] ss:$24 sps:$4 sm:$0xff]   ;;  %v1204_v34 = vld [vmem:[#allocation2 + $0x100] ss:$24 sps:$4 sm:$0xff]   ;;  %1041 = vmatprep.subr.bf16.mxu0 %v1206_v35 }
  0xe2   :  { %322 = vst [vmem:[#allocation2 + $0xe4] sm:$0xff] %v314_v28  ;;  %v238_v32 = vrot.slane %v232_v29, 4  ;;  %v237_v6 = vrot.slane %v230_v30, 4  ;;  %998 = vmatprep.subr.bf16.mxu1 %v1202_v31  ;;  %1042 = vmatpush1.bf16.msra.mxu0 %v1204_v34  ;;  %v1225_v27 = vld [vmem:[#allocation2 + $0x68] ss:$24 sps:$4 sm:$0xff]  }
  0xe3   :  { %999 = vmatpush1.bf16.msra.mxu1 %v1207_v0 }
  0xe4   :  { %v243_v1 = vsel %vm207_vm6, %v232_v29, %v238_v32  ;;  %v241_v7 = vsel %vm67_vm1, %v237_v6, %v238_v32 }
  0xe5   :  { %252 = vst [vmem:[#allocation2 + $0xa4] sm:$0xf] %v243_v1  ;;  %v242_v36 = vsel %vm207_vm6, %v230_v30, %v241_v7  ;;  %v236_v37 = vpop.permute.xlu1 %235  ;;  %v234_v38 = vpop.permute.xlu0 %233  ;;  %v1232_v1 = vld [vmem:[#allocation2 + $0xc] ss:$24 sps:$4 sm:$0xff]  }
  0xe6   :  { %251 = vst [vmem:[#allocation2 + $0x9c] sm:$0xff] %v242_v36  ;;  %v240_v39 = vrot.slane %v236_v37, 4  ;;  %v239_v40 = vrot.slane %v234_v38, 4  ;;  %v1236_v7 = vld [vmem:[#allocation2 + $0x14] ss:$24 sps:$4 sm:$0xff]  }
  0xe8   :  { %v246_v41 = vsel %vm207_vm6, %v236_v37, %v240_v39  ;;  %v244_v42 = vsel %vm67_vm1, %v239_v40, %v240_v39  ;;  %v1212_v50 = vld [vmem:[#allocation2 + $0xd4] ss:$24 sps:$4 sm:$0xff]   ;;  %v1231_v40 = vld [vmem:[#allocation2 + $0x38] ss:$24 sps:$4 sm:$0xff]  }
  0xe9   :  { %254 = vst [vmem:[#allocation2 + $0xbc] sm:$0xf] %v246_v41  ;;  %v245_v43 = vsel %vm207_vm6, %v234_v38, %v244_v42  ;;  %v163_v44 = vpop.permute.xlu1 %162  ;;  %v161_v45 = vpop.permute.xlu0 %160  ;;  %v1208_v46 = vld [vmem:[#allocation2 + $0xcc] ss:$24 sps:$4 sm:$0xff]   ;;  %v1210_v49 = vld [vmem:[#allocation2 + $0xd0] ss:$24 sps:$4 sm:$0xff]   ;;  %1043 = vmatprep.subr.bf16.mxu0 %v1212_v50 }
  0xea   :  { %253 = vst [vmem:[#allocation2 + $0xb4] sm:$0xff] %v245_v43  ;;  %v169_v47 = vrot.slane %v163_v44, 4  ;;  %v168_v48 = vrot.slane %v161_v45, 4  ;;  %1000 = vmatprep.subr.bf16.mxu1 %v1208_v46  ;;  %1044 = vmatpush1.bf16.msra.mxu0 %v1210_v49  ;;  %v1237_v41 = vld [vmem:[#allocation2 + $0x8] ss:$24 sps:$4 sm:$0xff]  }
  0xeb   :  { %1001 = vmatpush1.bf16.msra.mxu1 %v1213_v51  ;;  %v1234_v42 = vld [vmem:[#allocation2 + $0x10] ss:$24 sps:$4 sm:$0xff]  }
  0xec   :  { %v174_v10 = vsel %vm138_vm7, %v163_v44, %v169_v47  ;;  %v172_v52 = vsel %vm67_vm1, %v168_v48, %v169_v47  ;;  %v1243_v46 = vld [vmem:[#allocation2 + $0x188] ss:$24 sps:$4 sm:$0xff]  }
  0xed   :  { %183 = vst [vmem:[#allocation2 + $0x74] sm:$0xf] %v174_v10  ;;  %v173_v53 = vsel %vm138_vm7, %v161_v45, %v172_v52  ;;  %v167_v54 = vpop.permute.xlu1 %166  ;;  %v165_v55 = vpop.permute.xlu0 %164 }
  0xee   :  { %182 = vst [vmem:[#allocation2 + $0x6c] sm:$0xff] %v173_v53  ;;  %v171_v56 = vrot.slane %v167_v54, 4  ;;  %v170_v57 = vrot.slane %v165_v55, 4 }
  0xf0   :  { %v177_v58 = vsel %vm138_vm7, %v167_v54, %v171_v56  ;;  %v175_v59 = vsel %vm67_vm1, %v170_v57, %v171_v56  ;;  %v1218_v5 = vld [vmem:[#allocation2 + $0xa4] ss:$24 sps:$4 sm:$0xff]  }
  0xf1   :  { %185 = vst [vmem:[#allocation2 + $0x8c] sm:$0xf] %v177_v58  ;;  %v176_v60 = vsel %vm138_vm7, %v165_v55, %v175_v59  ;;  %v94_v61 = vpop.permute.xlu1 %93  ;;  %v92_v62 = vpop.permute.xlu0 %91  ;;  %v1214_v63 = vld [vmem:[#allocation2 + $0x9c] ss:$24 sps:$4 sm:$0xff]   ;;  %v1216_v4 = vld [vmem:[#allocation2 + $0xa0] ss:$24 sps:$4 sm:$0xff]   ;;  %1045 = vmatprep.subr.bf16.mxu0 %v1218_v5 }
  0xf2   :  { %184 = vst [vmem:[#allocation2 + $0x84] sm:$0xff] %v176_v60  ;;  %v100_v2 = vrot.slane %v94_v61, 4  ;;  %v99_v3 = vrot.slane %v92_v62, 4  ;;  %1002 = vmatprep.subr.bf16.mxu1 %v1214_v63  ;;  %1046 = vmatpush1.bf16.msra.mxu0 %v1216_v4 }
  0xf3   :  { %1003 = vmatpush1.bf16.msra.mxu1 %v1219_v8 }
  0xf4   :  { %v105_v9 = vsel %vm69_vm8, %v94_v61, %v100_v2  ;;  %v103_v11 = vsel %vm67_vm1, %v99_v3, %v100_v2 }
  0xf5   :  { %114 = vst [vmem:[#allocation2 + $0x44] sm:$0xf] %v105_v9  ;;  %v104_v12 = vsel %vm69_vm8, %v92_v62, %v103_v11  ;;  %v98_v13 = vpop.permute.xlu1 %97  ;;  %v96_v14 = vpop.permute.xlu0 %95 }
  0xf6   :  { %113 = vst [vmem:[#allocation2 + $0x3c] sm:$0xff] %v104_v12  ;;  %v102_v15 = vrot.slane %v98_v13, 4  ;;  %v101_v16 = vrot.slane %v96_v14, 4 }
  0xf8   :  { %v108_v17 = vsel %vm69_vm8, %v98_v13, %v102_v15  ;;  %v106_v18 = vsel %vm67_vm1, %v101_v16, %v102_v15  ;;  %v1224_v26 = vld [vmem:[#allocation2 + $0x74] ss:$24 sps:$4 sm:$0xff]  }
  0xf9   :  { %116 = vst [vmem:[#allocation2 + $0x5c] sm:$0xf] %v108_v17  ;;  %v107_v19 = vsel %vm69_vm8, %v96_v14, %v106_v18  ;;  %v577_v20 = vpop.permute.xlu1 %576  ;;  %v575_v21 = vpop.permute.xlu0 %574  ;;  %v1220_v22 = vld [vmem:[#allocation2 + $0x6c] ss:$24 sps:$4 sm:$0xff]   ;;  %v1222_v25 = vld [vmem:[#allocation2 + $0x70] ss:$24 sps:$4 sm:$0xff]   ;;  %1047 = vmatprep.subr.bf16.mxu0 %v1224_v26 }
  0xfa   :  { %115 = vst [vmem:[#allocation2 + $0x54] sm:$0xff] %v107_v19  ;;  %v583_v23 = vrot.slane %v577_v20, 4  ;;  %v582_v24 = vrot.slane %v575_v21, 4  ;;  %1004 = vmatprep.subr.bf16.mxu1 %v1220_v22  ;;  %1048 = vmatpush1.bf16.msra.mxu0 %v1222_v25 }
  0xfb   :  { %1005 = vmatpush1.bf16.msra.mxu1 %v1225_v27 }
  0xfc   :  { %v588_v28 = vsel %vm552_vm9, %v577_v20, %v583_v23  ;;  %v586_v29 = vsel %vm67_vm1, %v582_v24, %v583_v23 }
  0xfd   :  { %597 = vst [vmem:[#allocation2 + $0x194] sm:$0xf] %v588_v28  ;;  %v587_v30 = vsel %vm552_vm9, %v575_v21, %v586_v29  ;;  %v581_v31 = vpop.permute.xlu1 %580  ;;  %v579_v32 = vpop.permute.xlu0 %578 }
  0xfe   :  { %596 = vst [vmem:[#allocation2 + $0x18c] sm:$0xff] %v587_v30  ;;  %v585_v6 = vrot.slane %v581_v31, 4  ;;  %v584_v34 = vrot.slane %v579_v32, 4 }
 0x100   :  { %v591_v35 = vsel %vm552_vm9, %v581_v31, %v585_v6  ;;  %v589_v0 = vsel %vm67_vm1, %v584_v34, %v585_v6  ;;  %v1230_v39 = vld [vmem:[#allocation2 + $0x44] ss:$24 sps:$4 sm:$0xff]  }
 0x101   :  { %599 = vst [vmem:[#allocation2 + $0x1ac] sm:$0xf] %v591_v35  ;;  %v590_v36 = vsel %vm552_vm9, %v579_v32, %v589_v0  ;;  %v1226_v37 = vld [vmem:[#allocation2 + $0x3c] ss:$24 sps:$4 sm:$0xff]   ;;  %v1228_v38 = vld [vmem:[#allocation2 + $0x40] ss:$24 sps:$4 sm:$0xff]   ;;  %1049 = vmatprep.subr.bf16.mxu0 %v1230_v39 }
 0x102   :  { %598 = vst [vmem:[#allocation2 + $0x1a4] sm:$0xff] %v590_v36  ;;  %1006 = vmatprep.subr.bf16.mxu1 %v1226_v37  ;;  %1050 = vmatpush1.bf16.msra.mxu0 %v1228_v38 }
 0x103   :  { %1007 = vmatpush1.bf16.msra.mxu1 %v1231_v40  ;;  %1051 = vmatprep.subr.bf16.mxu0 %v1236_v7 }
 0x104   :  { %1008 = vmatprep.subr.bf16.mxu1 %v1232_v1 }
 0x106   :  { %1052 = vmatpush1.bf16.msra.mxu0 %v1234_v42 }
 0x107   :  { %1009 = vmatpush1.bf16.msra.mxu1 %v1237_v41 }
 0x108   :  { %v1242_v45 = vld [vmem:[#allocation2 + $0x194] ss:$24 sps:$4 sm:$0xff]  }
 0x109   :  { %v1238_v43 = vld [vmem:[#allocation2 + $0x18c] ss:$24 sps:$4 sm:$0xff]   ;;  %v1240_v44 = vld [vmem:[#allocation2 + $0x190] ss:$24 sps:$4 sm:$0xff]   ;;  %1067 = vmatprep.subr.bf16.mxu0 %v1242_v45 }
 0x10a   :  { %1024 = vmatprep.subr.bf16.mxu1 %v1238_v43  ;;  %1068 = vmatpush2.bf16.msra.mxu0 %v1240_v44  ;;  %v661_v47 = vpop.permute.xlu0 %660  ;;  %v666_v51 = vpop.permute.xlu1 %665 }
 0x10b   :  { %1025 = vmatpush2.bf16.msra.mxu1 %v1243_v46 }
 0x10d   :  { %1070 = vmatmul.mubr.bf16.vlgmr.msra.gmra.mxu0 %v1520_v33 }
 0x10e   :  { %1027 = vmatmul.mubr.bf16.vlgmr.msra.gmra.mxu1 %v1520_v33 }
 0x188   :  { %v985_v48 = vpop.f32.mrf.mxu0 }
 0x189   :  { %v986_v49 = vadd.f32 %v985_v48, %v661_v47 }
 0x18a   :  { %v987_v50 = vpop.f32.mrf.mxu0 }
 0x18b   :  { %v988_v10 = vadd.f32 %v987_v50, %v661_v47  ;;  %1080 = vst [vmem:[#allocation6] sm:$0xff] %v986_v49 }
 0x18c   :  { %v989_v52 = vpop.f32.mrf.mxu0 }
 0x18d   :  { %v990_v53 = vadd.f32 %v989_v52, %v666_v51  ;;  %1081 = vst [vmem:[#allocation6 + $0x8] sm:$0xff] %v988_v10 }
 0x18e   :  { %v991_v54 = vpop.f32.mrf.mxu0 }
 0x18f   :  { %1086 = vst [vmem:[#allocation6 + $0x30] sm:$0xff] %v990_v53  ;;  %v992_v55 = vadd.f32 %v991_v54, %v666_v51 }
 0x191   :  { %1087 = vst [vmem:[#allocation6 + $0x38] sm:$0xff] %v992_v55 }
 0x1cd   :  { %v1071_v58 = vpop.f32.mrf.mxu0 }
 0x1ce   :  { %v1028_v56 = vpop.f32.mrf.mxu1  ;;  %v1072_v59 = vadd.f32 %v1071_v58, %v661_v47 }
 0x1cf   :  { %v1029_v57 = vadd.f32 %v1028_v56, %v661_v47  ;;  %v1073_v61 = vpop.f32.mrf.mxu0 }
 0x1d0   :  { %v1030_v60 = vpop.f32.mrf.mxu1  ;;  %1084 = vst [vmem:[#allocation6 + $0x20] sm:$0xff] %v1072_v59  ;;  %v1074_v62 = vadd.f32 %v1073_v61, %v661_v47 }
 0x1d1   :  { %1082 = vst [vmem:[#allocation6 + $0x10] sm:$0xff] %v1029_v57  ;;  %v1031_v33 = vadd.f32 %v1030_v60, %v661_v47  ;;  %v1075_v3 = vpop.f32.mrf.mxu0 }
 0x1d2   :  { %v1032_v63 = vpop.f32.mrf.mxu1  ;;  %1085 = vst [vmem:[#allocation6 + $0x28] sm:$0xff] %v1074_v62  ;;  %v1076_v4 = vadd.f32 %v1075_v3, %v666_v51 }
 0x1d3   :  { %1083 = vst [vmem:[#allocation6 + $0x18] sm:$0xff] %v1031_v33  ;;  %v1033_v2 = vadd.f32 %v1032_v63, %v666_v51  ;;  %v1077_v9 = vpop.f32.mrf.mxu0 }
 0x1d4   :  { %v1034_v5 = vpop.f32.mrf.mxu1  ;;  %1090 = vst [vmem:[#allocation6 + $0x50] sm:$0xff] %v1076_v4  ;;  %v1078_v11 = vadd.f32 %v1077_v9, %v666_v51 }
 0x1d5   :  { %1088 = vst [vmem:[#allocation6 + $0x40] sm:$0xff] %v1033_v2  ;;  %v1035_v8 = vadd.f32 %v1034_v5, %v666_v51 }
 0x1d6   :  { %1091 = vst [vmem:[#allocation6 + $0x58] sm:$0xff] %v1078_v11 }
 0x1d7   :  { %1089 = vst [vmem:[#allocation6 + $0x48] sm:$0xff] %v1035_v8 }
 0x1d8   :  { %1275 = shalt.err (!%p1272_p9)
}
 0x1d9   :  { %s1301_s8 = smov 768   ;;  %s1302_s9 = smov 48  }
 0x1da   :  { %1103 = dma.vmem_to_hbm [thread:$0]  %s1098_s6, 1536, %s1579_s3, [#allocation5], %s1301_s8, %s1301_s8, %s1302_s9  }
 0x1db   :  { %1286 = dma.done.wait [#allocation5], 1536  }
 0x1dc   :  { %1287 = vsyncadd [#allocation5], 4294965760 }
 0x1dd   :  { %1107 = vsyncpa [#allocation4], 1 }
 0x1de   :  { %1108 = vsyncpa [#allocation5], 1 }

</bundles_post_ra>
